<compile_context>
chip_gen: v7x
topology: tpu7x:2x2x1
jax: 0.10.0
libtpu: 0.0.40
codegen_flags: <defaults>
</compile_context>

<pallas_src>
import functools

import jax
import jax.numpy as jnp
from jax.experimental import pallas as pl
from jax.experimental.pallas import tpu as pltpu

_LANE = 128


def _rmsnorm_kernel(x_ref, w_ref, o_ref, *, eps, hidden_actual):
    # x_ref: (row_tile, hidden_padded) block in VMEM
    # w_ref: (1, hidden_padded) block in VMEM (constant block index -> stays resident)
    x = x_ref[...]
    input_dtype = x.dtype
    xf = x.astype(jnp.float32)
    # sum-of-squares / true hidden (padded lanes are zero, so they don't perturb the sum)
    ssq = jnp.sum(xf * xf, axis=-1, keepdims=True)
    variance = ssq * (1.0 / float(hidden_actual))
    normed = xf * jax.lax.rsqrt(variance + eps)
    # torch: weight * hidden_states.to(input_dtype) -- multiply in the naturally
    # promoted dtype (bf16*bf16 -> bf16, f32 path stays f32 with no extra casts).
    out = w_ref[...] * normed.astype(input_dtype)
    o_ref[...] = out.astype(o_ref.dtype)


def _vmem_capacity_bytes():
    try:
        info = pltpu.get_tpu_info()
        cap = int(getattr(info, "vmem_capacity_bytes"))
        if cap > 0:
            return cap
    except Exception:
        pass
    return 64 << 20  # conservative fallback (v7x-sized)


def rmsnorm(x, weight, eps=1e-6, *, row_tile=None, out_dtype=None,
            vmem_budget_bytes=None):
    """x: (..., hidden) array. weight: (hidden,).

    Output dtype matches torch's `weight * x.to(input_dtype)` promotion by default;
    override with out_dtype (e.g. bf16) to cut writeback bytes on bandwidth-bound chips.
    """
    hidden = x.shape[-1]
    lead_shape = x.shape[:-1]
    rows = 1
    for d in lead_shape:
        rows *= d

    if out_dtype is None:
        out_dtype = jnp.promote_types(x.dtype, weight.dtype)

    if rows == 0:
        return jnp.zeros(lead_shape + (hidden,), dtype=out_dtype)

    in_bytes = jnp.dtype(x.dtype).itemsize
    out_bytes = jnp.dtype(out_dtype).itemsize
    w_bytes = jnp.dtype(weight.dtype).itemsize

    # --- lane-dense hidden: pad to a multiple of 128 if ragged ---------------------
    hidden_p = ((hidden + _LANE - 1) // _LANE) * _LANE
    x2d = x.reshape(rows, hidden)
    w2d = weight.reshape(1, hidden)
    if hidden_p != hidden:
        x2d = jnp.pad(x2d, ((0, 0), (0, hidden_p - hidden)))
        w2d = jnp.pad(w2d, ((0, 0), (0, hidden_p - hidden)))

    # --- generation-aware VMEM budget / cap ----------------------------------------
    vmem_cap = _vmem_capacity_bytes()
    if vmem_budget_bytes is None:
        # ~half of physical VMEM for the pipelined tiles (32 MiB v7x, 64 MiB v5e/v6e)
        vmem_budget_bytes = min(vmem_cap // 2, 64 << 20)
    hard_cap = max(min(vmem_cap * 3 // 4, 100 << 20), 16 << 20)  # ~48 MiB on v7x

    # --- per-row byte cost, including f32 intermediates for sub-f32 inputs ----------
    per_row = hidden_p * (in_bytes + out_bytes) * 2  # double-buffered in + out
    if in_bytes < 4:
        per_row += 2 * hidden_p * 4                  # xf + working temp at f32 width

    # --- dtype-aware sublane packing multiple ---------------------------------------
    min_itemsize = min(in_bytes, out_bytes)
    sublane = max(8, 32 // max(min_itemsize, 1))     # 8 f32 / 16 bf16 / 32 int8,fp8
    rows_aligned = ((rows + sublane - 1) // sublane) * sublane

    # --- choose row_tile: fill the budget, but keep >= ~4 grid steps when possible ---
    if row_tile is None:
        row_tile = max(vmem_budget_bytes // max(per_row, 1), sublane)
        row_tile = min(row_tile, 1024)               # gains flatten past ~512-1024 rows
        min_steps = 4                                 # pipelining + v7x megacore sharding
        if rows_aligned >= min_steps * sublane:
            step_cap = (rows_aligned + min_steps - 1) // min_steps
            step_cap = max(sublane, (step_cap // sublane) * sublane)
            row_tile = min(row_tile, step_cap)
    row_tile = min(row_tile, rows_aligned)
    row_tile = max(sublane, (row_tile // sublane) * sublane)

    grid = (pl.cdiv(rows, row_tile),)

    # --- scoped VMEM limit: actual footprint (+ headroom), capped generation-aware ---
    footprint = 2 * row_tile * hidden_p * (in_bytes + out_bytes)   # pipelined in + out
    footprint += 2 * hidden_p * w_bytes                            # weight double-buffer
    if in_bytes < 4:
        footprint += 2 * row_tile * hidden_p * 4                   # f32 intermediates
    vmem_limit = int(min(max(footprint + (4 << 20), 16 << 20), hard_cap))

    out2d = pl.pallas_call(
        functools.partial(_rmsnorm_kernel, eps=eps, hidden_actual=hidden),
        out_shape=jax.ShapeDtypeStruct((rows, hidden_p), out_dtype),
        grid_spec=pltpu.PrefetchScalarGridSpec(
            num_scalar_prefetch=0,
            grid=grid,
            in_specs=[
                pl.BlockSpec((row_tile, hidden_p), lambda i: (i, 0)),
                pl.BlockSpec((1, hidden_p), lambda i: (0, 0)),  # constant block -> resident
            ],
            out_specs=pl.BlockSpec((row_tile, hidden_p), lambda i: (i, 0)),
        ),
        compiler_params=pltpu.CompilerParams(
            dimension_semantics=("parallel",),   # sharded across the 2 TCs on v7x
            vmem_limit_bytes=vmem_limit,
        ),
    )(x2d, w2d)

    if hidden_p != hidden:
        out2d = out2d[:, :hidden]
    return out2d.reshape(*lead_shape, hidden)


def _reference(x, weight, eps):
    # mirrors torch forward: f32 variance, rsqrt, weight * normed.to(input_dtype)
    xf = x.astype(jnp.float32)
    var = jnp.mean(xf * xf, axis=-1, keepdims=True)
    normed = xf * jax.lax.rsqrt(var + eps)
    return weight * normed.astype(x.dtype)


if __name__ == "__main__":
    eps = 1e-6
    key = jax.random.PRNGKey(0)
    k1, k2, k3 = jax.random.split(key, 3)

    # check 1: f32, lane-dense hidden (module init: weight = ones(hidden))
    batch, seq, hidden = 2, 8, 128
    x = jax.random.normal(k1, (batch, seq, hidden), dtype=jnp.float32)
    weight = jnp.ones((hidden,), dtype=jnp.float32)
    out = jax.block_until_ready(rmsnorm(x, weight, eps))
    ref = _reference(x, weight, eps)
    assert out.shape == ref.shape and out.dtype == ref.dtype
    assert jnp.allclose(out, ref, atol=1e-5, rtol=1e-5)

    # check 2: ragged hidden (96 -> padded to 128 inside) + rows not a tile multiple
    x2 = jax.random.normal(k2, (2, 5, 96), dtype=jnp.float32)
    w2 = 1.0 + 0.1 * jax.random.normal(k3, (96,), dtype=jnp.float32)
    out2 = jax.block_until_ready(rmsnorm(x2, w2, eps))
    ref2 = _reference(x2, w2, eps)
    assert out2.shape == ref2.shape and out2.dtype == ref2.dtype
    assert jnp.allclose(out2, ref2, atol=1e-5, rtol=1e-5)

    # check 3: bf16 activations + bf16 weight (final multiply stays in bf16, like torch)
    x3 = jax.random.normal(k1, (4, 8, 128), dtype=jnp.float32).astype(jnp.bfloat16)
    w3 = (jnp.ones((128,), dtype=jnp.float32) * 1.5).astype(jnp.bfloat16)
    out3 = jax.block_until_ready(rmsnorm(x3, w3, eps))
    ref3 = _reference(x3, w3, eps)
    assert out3.shape == ref3.shape and out3.dtype == jnp.bfloat16
    assert jnp.allclose(out3.astype(jnp.float32), ref3.astype(jnp.float32),
                        atol=2e-2, rtol=2e-2)

    print("KERNEL_OK")
</pallas_src>

<mosaic_0001>
module attributes {stable_mosaic.version = 11 : i64} {
  func.func @_rmsnorm_kernel(%arg0: i32, %arg1: memref<16x128xf32, #tpu.memory_space<vmem>>, %arg2: memref<1x128xf32, #tpu.memory_space<vmem>>, %arg3: memref<16x128xf32, #tpu.memory_space<vmem>>) attributes {dimension_semantics = [#tpu.dimension_semantics<parallel>], iteration_bounds = array<i64: 1>, scalar_prefetch = 0 : i64, scratch_operands = 0 : i64, tpu.core_type = #tpu.core_type<tc>, window_params = [{transform_indices = @transform_0, window_bounds = array<i64: 16, 128>}, {pipeline_mode = #tpu.pipeline_mode<synchronous>, transform_indices = @transform_1, window_bounds = array<i64: 1, 128>}, {transform_indices = @transform_2, window_bounds = array<i64: 16, 128>}]} {
    %c0 = arith.constant 0 : index
    %c0_0 = arith.constant 0 : index
    %0 = vector.load %arg1[%c0, %c0_0] : memref<16x128xf32, #tpu.memory_space<vmem>>, vector<16x128xf32>
    %1 = arith.mulf %0, %0 : vector<16x128xf32>
    %cst = arith.constant dense<0.000000e+00> : vector<16xf32>
    %2 = vector.multi_reduction <add>, %1, %cst [1] : vector<16x128xf32> to vector<16xf32>
    %3 = vector.shape_cast %2 : vector<16xf32> to vector<16x1xf32>
    %cst_1 = arith.constant 7.812500e-03 : f32
    %4 = vector.broadcast %cst_1 : f32 to vector<16x1xf32>
    %5 = arith.mulf %3, %4 : vector<16x1xf32>
    %cst_2 = arith.constant 9.99999997E-7 : f32
    %6 = vector.broadcast %cst_2 : f32 to vector<16x1xf32>
    %7 = arith.addf %5, %6 : vector<16x1xf32>
    %8 = math.rsqrt %7 : vector<16x1xf32>
    %9 = vector.broadcast %8 : vector<16x1xf32> to vector<16x128xf32>
    %10 = arith.mulf %0, %9 : vector<16x128xf32>
    %c0_3 = arith.constant 0 : index
    %c0_4 = arith.constant 0 : index
    %11 = vector.load %arg2[%c0_3, %c0_4] : memref<1x128xf32, #tpu.memory_space<vmem>>, vector<1x128xf32>
    %12 = vector.broadcast %11 : vector<1x128xf32> to vector<16x128xf32>
    %13 = arith.mulf %12, %10 : vector<16x128xf32>
    %c0_5 = arith.constant 0 : index
    %c0_6 = arith.constant 0 : index
    %14 = vector.load %arg3[%c0_5, %c0_6] : memref<16x128xf32, #tpu.memory_space<vmem>>, vector<16x128xf32>
    tpu.vector_store %arg3[%c0_5, %c0_6], %13 {strides = array<i32>} : memref<16x128xf32, #tpu.memory_space<vmem>>, vector<16x128xf32>,
    return
  }
  func.func @transform_0(%arg0: i32) -> (i32, i32) {
    %c0_i32 = arith.constant 0 : i32
    %c0_i32_0 = arith.constant 0 : i32
    return %arg0, %c0_i32 : i32, i32
  }
  func.func @transform_1(%arg0: i32) -> (i32, i32) {
    %c0_i32 = arith.constant 0 : i32
    %c0_i32_0 = arith.constant 0 : i32
    %c0_i32_1 = arith.constant 0 : i32
    return %c0_i32, %c0_i32_0 : i32, i32
  }
  func.func @transform_2(%arg0: i32) -> (i32, i32) {
    %c0_i32 = arith.constant 0 : i32
    %c0_i32_0 = arith.constant 0 : i32
    return %arg0, %c0_i32 : i32, i32
  }
}

</mosaic_0001>

<bundles_post_ra>
// kernel: tpu_custom_call.1
= control target key start
LH: loop header
LB: loop body
LE: loop exit
PB: predicated region body
PF: predicated region fallthrough
CT: control target
= control target key end

     0   :  { %7 = vsyncpa [#allocation3], 0  ;;  %s179_s0 = inlined_call_operand.hbm [shape: f32[16,128], index: 0, kind: input, shape index: {}]   ;;  %s180_s1 = inlined_call_operand.vmem [shape: f32[1,128], index: 1, kind: input, shape index: {}]   ;;  %s181_s2 = inlined_call_operand.hbm [shape: f32[16,128], index: 2, kind: output, shape index: {}]  }
   0x1   :  { %8 = vsyncpa [#allocation4], 0  ;;  %s127_s9 = smov [#allocation2]   ;;  %s79_s13 = scalar_lea.hbm %s179_s0, 256 }
   0x2   :  { %s14_s10 = sshll.u32 %s127_s9, 4  ;;  %p80_p0 = scmp.ne.s32.totalorder %s179_s0, %s79_s13  ;;  %s15_s10 = int_to_ptr.vmem [resolvable:$true] %s14_s10 }
   0x3   :  { %p83_p1 = scmp.lt.u32.totalorder %s79_s13, %s179_s0 }
   0x5   :  { %p85_p2 = pnand %p83_p1, %p80_p0 }
   0x7   :  { %88 = shalt.err (!%p85_p2)
}
   0x8   :  { %s89_s18 = scalar_lea.vmem %s15_s10, 256  ;;  %p94_p4 = scmp.lt.s32.totalorder %s15_s10, %s15_s10 }
   0x9   :  { %p90_p3 = scmp.ne.s32.totalorder %s15_s10, %s89_s18  ;;  %p95_p5 = scmp.lt.s32.totalorder %s89_s18, %s89_s18 }
   0xb   :  { %p96_p6 = por %p95_p5, %p94_p4 }
   0xd   :  { %p97_p7 = pnand %p96_p6, %p90_p3 }
   0xf   :  { %100 = shalt.err (!%p97_p7)
}
  0x10   :  { %s128_s19 = smov 128   ;;  %s129_s20 = smov 8  }
  0x11   :  { %20 = dma.hbm_to_vmem [thread:$0]  %s179_s0, 256, %s15_s10, [#allocation3], %s128_s19, %s128_s19, %s129_s20  }
  0x12   :  { %123 = dma.done.wait [#allocation3], 256  }
  0x13   :  { %124 = vsyncadd [#allocation3], 4294967040  ;;  %v26_v0 = vld [vmem:[#allocation2] sm:$0xff]  ;;  %v27_v1 = vld [vmem:[#allocation2 + $0x8] sm:$0xff]  ;;  %s130_s0 = smov [#allocation5]  }
  0x14   :  { %v28_v2 = vmul.f32 %v26_v0, %v26_v0  ;;  %v29_v3 = vmul.f32 %v27_v1, %v27_v1  ;;  %v70_v11 = vld [vmem:[%s180_s1] ss:$0 sm:$0xff]  ;;  %s58_s25 = sshll.u32 %s130_s0, 4  ;;  %s59_s25 = int_to_ptr.vmem [resolvable:$true] %s58_s25 }
  0x15   :  { %s101_s26 = scalar_lea.vmem %s59_s25, 256  ;;  %p106_p9 = scmp.lt.s32.totalorder %s59_s25, %s59_s25 }
  0x16   :  { %30 = vadd.xlane.f32.xlu0 %v28_v2  ;;  %p102_p8 = scmp.ne.s32.totalorder %s59_s25, %s101_s26  ;;  %p107_p10 = scmp.lt.s32.totalorder %s101_s26, %s101_s26 }
  0x18   :  { %p108_p11 = por %p107_p10, %p106_p9 }
  0x1a   :  { %32 = vadd.xlane.f32.xlu0 %v29_v3  ;;  %p109_p12 = pnand %p108_p11, %p102_p8 }
  0xa3   :  { %v31_v4 = vpop.xlane.xlu0 %30 }
  0xa4   :  { %v34_v5 = vmul.f32 0.0078125, %v31_v4 }
  0xa6   :  { %v36_v6 = vadd.f32 1e-06, %v34_v5 }
  0xa7   :  { %v33_v7 = vpop.xlane.xlu0 %32 }
  0xa8   :  { %75 = vrsqrt.f32 %v36_v6  ;;  %v35_v8 = vmul.f32 0.0078125, %v33_v7 }
  0xaa   :  { %v37_v9 = vadd.f32 1e-06, %v35_v8 }
  0xac   :  { %77 = vrsqrt.f32 %v37_v9 }
  0xb2   :  { %v76_v10 = vpop.eup %75 }
  0xb3   :  { %v40_v12 = vmul.f32 %v76_v10, %v26_v0 }
  0xb5   :  { %v49_v13 = vmul.f32 %v70_v11, %v40_v12 }
  0xb6   :  { %v78_v14 = vpop.eup %77 }
  0xb7   :  { %v41_v15 = vmul.f32 %v78_v14, %v27_v1  ;;  %51 = vst [vmem:[#allocation5] sm:$0xff] %v49_v13 }
  0xb9   :  { %v50_v16 = vmul.f32 %v70_v11, %v41_v15 }
  0xbb   :  { %52 = vst [vmem:[#allocation5 + $0x8] sm:$0xff] %v50_v16 }
  0xbc   :  { %112 = shalt.err (!%p109_p12)
}
  0xbd   :  { %s113_s1 = scalar_lea.hbm %s181_s2, 256 }
  0xbe   :  { %p114_p13 = scmp.ne.s32.totalorder %s181_s2, %s113_s1  ;;  %p117_p0 = scmp.lt.u32.totalorder %s113_s1, %s181_s2 }
  0xc0   :  { %p119_p1 = pnand %p117_p0, %p114_p13 }
  0xc2   :  { %122 = shalt.err (!%p119_p1)
}
  0xc3   :  { %64 = dma.vmem_to_hbm [thread:$0]  %s59_s25, 256, %s181_s2, [#allocation4], %s128_s19, %s128_s19, %s129_s20  }
  0xc4   :  { %125 = dma.done.wait [#allocation4], 256  }
  0xc5   :  { %126 = vsyncadd [#allocation4], 4294967040 }
  0xc6   :  { %68 = vsyncpa [#allocation3], 1 }
  0xc7   :  { %69 = vsyncpa [#allocation4], 1 }

</bundles_post_ra>
